<compile_context>
chip_gen: v7x
topology: tpu7x:2x2x1
jax: 0.10.0
libtpu: 0.0.40
codegen_flags: <defaults>
</compile_context>

<pallas_src>
import functools

import numpy as np
import jax
import jax.numpy as jnp
from jax import lax
from jax.experimental import pallas as pl
from jax.experimental.pallas import tpu as pltpu


_TILE_VMEM_BUDGET = 4 * 1024 * 1024   # native-dtype bytes per [rows, width] tile
_GN_MAX_ROWS = 8192                    # bounds the per-tile one-hot in GraphNorm


def _round_up(n, m):
    return (n + m - 1) // m * m


@functools.lru_cache(maxsize=None)
def _vmem_limit_bytes():
    """Generation-aware scoped-VMEM limit (<= 3/4 of physical, <= 96 MiB)."""
    try:
        cap = int(pltpu.get_tpu_info().vmem_capacity_bytes)
    except Exception:
        cap = 64 * 1024 * 1024          # v7x-safe fallback
    return int(min(cap * 3 // 4, 96 * 1024 * 1024))


def _cparams(semantics):
    return pltpu.CompilerParams(dimension_semantics=(semantics,),
                                vmem_limit_bytes=_vmem_limit_bytes())


def _pick_rows(n_rows, width, itemsize, *, row_mult, cap=None):
    """Rows per tile: multiple of row_mult, bounded by the VMEM tile budget."""
    budget_rows = max(row_mult, _TILE_VMEM_BUDGET // max(width * itemsize, 1))
    rows = max(row_mult, budget_rows // row_mult * row_mult)
    if cap is not None:
        rows = min(rows, max(row_mult, int(cap) // row_mult * row_mult))
    rows = min(rows, _round_up(max(n_rows, 1), row_mult))
    return int(max(row_mult, rows))


def _row_mult(itemsize):
    # second-minor tiling multiple: 8 for f32, 16 for bf16, 32 for int8/fp8
    return max(8, 32 // int(itemsize))


# ---------------------------------------------------------------------------
# LayerNorm: one row-tiled, fully parallel pass.
# ---------------------------------------------------------------------------

def _layernorm_kernel(x_ref, w_ref, b_ref, o_ref, *, eps):
    x = x_ref[...].astype(jnp.float32)                       # [TN, H]
    mean = jnp.mean(x, axis=-1, keepdims=True)
    xm = x - mean
    var = jnp.mean(xm * xm, axis=-1, keepdims=True)          # biased
    y = xm * lax.rsqrt(var + eps)
    o_ref[...] = (y * w_ref[...] + b_ref[...]).astype(o_ref.dtype)


def layernorm(x, weight, bias, max_rows_per_tile=None, eps=1e-5):
    x = jnp.asarray(x)                                       # native dtype, no copy
    N, H = x.shape
    itemsize = jnp.dtype(x.dtype).itemsize
    tn = _pick_rows(N, H, itemsize, row_mult=_row_mult(itemsize),
                    cap=max_rows_per_tile)
    nt = -(-N // tn)
    w = jnp.asarray(weight, jnp.float32).reshape(1, H)
    b = jnp.asarray(bias, jnp.float32).reshape(1, H)
    return pl.pallas_call(
        functools.partial(_layernorm_kernel, eps=eps),
        out_shape=jax.ShapeDtypeStruct((N, H), x.dtype),
        grid=(nt,),
        in_specs=[pl.BlockSpec((tn, H), lambda i: (i, 0)),
                  pl.BlockSpec((1, H), lambda i: (0, 0)),
                  pl.BlockSpec((1, H), lambda i: (0, 0))],
        out_specs=pl.BlockSpec((tn, H), lambda i: (i, 0)),
        compiler_params=_cparams("parallel"),
    )(x, w, b)
    # TODO(synk): lane-dense repack for H < 128 needs an in-kernel segmented
    # per-row reduction (each packed 128-lane row holds several nodes); kept at
    # the natural [N, H] layout for LayerNorm.


# ---------------------------------------------------------------------------
# Shared elementwise affine apply:  o = x * scale + shift
# ---------------------------------------------------------------------------

def _affine_kernel(x_ref, scale_ref, shift_ref, o_ref):
    x = x_ref[...].astype(jnp.float32)                       # [TN, W]
    o_ref[...] = (x * scale_ref[...] + shift_ref[...]).astype(o_ref.dtype)


# ---------------------------------------------------------------------------
# BatchNorm1d (training-mode batch statistics): two-phase, lane-dense for H<128.
# ---------------------------------------------------------------------------

def _bn_stats_kernel(x_ref, s_ref, q_ref, *, n_rows, tile_rows):
    i = pl.program_id(0)

    @pl.when(i == 0)
    def _():
        s_ref[...] = jnp.zeros_like(s_ref)
        q_ref[...] = jnp.zeros_like(q_ref)

    x = x_ref[...].astype(jnp.float32)                       # [TN, W]
    rem = n_rows % tile_rows
    if rem == 0:                                             # exact tiling: no mask
        s_ref[...] += jnp.sum(x, axis=0, keepdims=True)
        q_ref[...] += jnp.sum(x * x, axis=0, keepdims=True)
    else:
        last = pl.num_programs(0) - 1

        @pl.when(i != last)                                  # common tiles: no mask
        def _():
            s_ref[...] += jnp.sum(x, axis=0, keepdims=True)
            q_ref[...] += jnp.sum(x * x, axis=0, keepdims=True)

        @pl.when(i == last)                                  # tail tile: mask rows
        def _():
            rows = lax.broadcasted_iota(jnp.int32, (tile_rows, 1), 0)
            xv = jnp.where(rows < rem, x, 0.0)
            s_ref[...] += jnp.sum(xv, axis=0, keepdims=True)
            q_ref[...] += jnp.sum(xv * xv, axis=0, keepdims=True)
    # TODO(synk): on v7x, split this reduction across both TensorCores
    # (leading "parallel" axis, per-core partial sums combined in the wrapper).


def batchnorm(x, weight, bias, max_rows_per_tile=None, eps=1e-5):
    x = jnp.asarray(x)                                       # native dtype, no copy
    N, H = x.shape
    itemsize = jnp.dtype(x.dtype).itemsize
    w = jnp.asarray(weight, jnp.float32).reshape(1, H)
    b = jnp.asarray(bias, jnp.float32).reshape(1, H)

    # Lane-dense repack for narrow feature dims: [N, H] -> [N*H/128, 128]
    # (free row-major reshape; layout plumbing only).
    pack = (H < 128) and (128 % H == 0) and ((N * H) % 128 == 0) and N > 0
    if pack:
        r = 128 // H
        xw = x.reshape((N * H) // 128, 128)
    else:
        r = 1
        xw = x
    M, W = xw.shape

    tn = _pick_rows(M, W, itemsize, row_mult=_row_mult(itemsize),
                    cap=max_rows_per_tile)
    nt = -(-M // tn)

    s, q = pl.pallas_call(
        functools.partial(_bn_stats_kernel, n_rows=M, tile_rows=tn),
        out_shape=(jax.ShapeDtypeStruct((1, W), jnp.float32),
                   jax.ShapeDtypeStruct((1, W), jnp.float32)),
        grid=(nt,),
        in_specs=[pl.BlockSpec((tn, W), lambda i: (i, 0))],
        out_specs=(pl.BlockSpec((1, W), lambda i: (0, 0)),
                   pl.BlockSpec((1, W), lambda i: (0, 0))),
        compiler_params=_cparams("arbitrary"),
    )(xw)

    # Tiny finalize on [1, H] arrays in the wrapper (per review).
    if pack:
        s = s.reshape(r, H).sum(axis=0, keepdims=True)
        q = q.reshape(r, H).sum(axis=0, keepdims=True)
    inv_n = 1.0 / float(N)
    mean = s * inv_n
    var = jnp.maximum(q * inv_n - mean * mean, 0.0)          # biased variance
    inv = lax.rsqrt(var + eps)
    scale = w * inv                                          # [1, H]
    shift = b - mean * scale                                 # [1, H]
    if pack:
        scale = jnp.tile(scale, (1, r))                      # [1, 128]
        shift = jnp.tile(shift, (1, r))

    out = pl.pallas_call(
        _affine_kernel,
        out_shape=jax.ShapeDtypeStruct((M, W), x.dtype),
        grid=(nt,),
        in_specs=[pl.BlockSpec((tn, W), lambda i: (i, 0)),
                  pl.BlockSpec((1, W), lambda i: (0, 0)),
                  pl.BlockSpec((1, W), lambda i: (0, 0))],
        out_specs=pl.BlockSpec((tn, W), lambda i: (i, 0)),
        compiler_params=_cparams("parallel"),
    )(xw, scale, shift)
    return out.reshape(N, H) if pack else out
    # TODO(synk): BatchNorm1d running-stats (momentum) update / eval-mode stats
    # are inference-only bookkeeping and are not reproduced here.


# ---------------------------------------------------------------------------
# GraphNorm: two-phase, one-hot MXU segment statistics (no O(B) VPU loops).
# ---------------------------------------------------------------------------

def _gn_stats_kernel(segrow_ref, x_ref, s_ref, q_ref, *, n_rows, tile_rows,
                     n_graphs):
    i = pl.program_id(0)

    @pl.when(i == 0)
    def _():
        s_ref[...] = jnp.zeros_like(s_ref)
        q_ref[...] = jnp.zeros_like(q_ref)

    x = x_ref[...].astype(jnp.float32)                       # [TN, H]
    seg = segrow_ref[...]                                    # [1, TN] (lane-major)
    gids = lax.broadcasted_iota(jnp.int32, (n_graphs, 1), 0)
    onehot_t = (gids == seg).astype(jnp.float32)             # [B, TN], built in place

    def acc(xv):
        s_ref[...] += jnp.dot(onehot_t, xv, preferred_element_type=jnp.float32)
        q_ref[...] += jnp.dot(onehot_t, xv * xv,
                              preferred_element_type=jnp.float32)

    rem = n_rows % tile_rows
    if rem == 0:
        acc(x)
    else:
        last = pl.num_programs(0) - 1

        @pl.when(i != last)
        def _():
            acc(x)

        @pl.when(i == last)                                  # mask tail rows (NaN-safe)
        def _():
            rows = lax.broadcasted_iota(jnp.int32, (tile_rows, 1), 0)
            acc(jnp.where(rows < rem, x, 0.0))
    # TODO(synk): v7x 2-TC split of this reduction (per-core partials).


def _gn_apply_kernel(seg_ref, x_ref, scale_ref, shift_ref, o_ref, *, n_graphs):
    x = x_ref[...].astype(jnp.float32)                       # [TN, H]
    seg = seg_ref[...]                                       # [TN, 1]
    gids = lax.broadcasted_iota(jnp.int32, (1, n_graphs), 1)
    onehot = (seg == gids).astype(jnp.float32)               # [TN, B]
    # Gather per-node scale/shift with two MXU matmuls (MXU is otherwise idle).
    scale_n = jnp.dot(onehot, scale_ref[...], preferred_element_type=jnp.float32)
    shift_n = jnp.dot(onehot, shift_ref[...], preferred_element_type=jnp.float32)
    o_ref[...] = (x * scale_n + shift_n).astype(o_ref.dtype)
    # TODO(synk): lane-dense repack for H < 128 would need per-node params
    # gathered at a packed-row granularity; kept at the natural [N, H] layout.


def graphnorm(x, batch_num_nodes, weight, bias, mean_scale,
              max_rows_per_tile=None, eps=1e-6):
    x = jnp.asarray(x)                                       # native dtype, no copy
    N, H = x.shape
    itemsize = jnp.dtype(x.dtype).itemsize
    counts = jnp.asarray(batch_num_nodes, jnp.int32).reshape(-1)
    B = int(counts.shape[0])

    # O(N) glue only: per-node graph id (nodes are contiguous per graph).
    # Assumes sum(batch_num_nodes) == N (jnp.repeat silently pads/truncates
    # otherwise).
    seg = jnp.repeat(jnp.arange(B, dtype=jnp.int32), counts,
                     total_repeat_length=N)
    seg_col = seg.reshape(N, 1)                              # for the apply pass
    seg_row = seg.reshape(1, N)                              # lane-major, stats pass

    w = jnp.asarray(weight, jnp.float32).reshape(1, H)
    ms = jnp.asarray(mean_scale, jnp.float32).reshape(1, H)
    b = jnp.asarray(bias, jnp.float32).reshape(1, H)

    # Row tiles: multiple of 128 so the lane-major seg block (1, tn) is legal,
    # and capped so the per-tile one-hot stays small in VMEM.
    cap = _GN_MAX_ROWS if max_rows_per_tile is None else min(
        int(max_rows_per_tile), _GN_MAX_ROWS)
    tn = _pick_rows(N, H, itemsize, row_mult=128, cap=cap)
    nt = -(-N // tn)

    sums, sqs = pl.pallas_call(
        functools.partial(_gn_stats_kernel, n_rows=N, tile_rows=tn, n_graphs=B),
        out_shape=(jax.ShapeDtypeStruct((B, H), jnp.float32),
                   jax.ShapeDtypeStruct((B, H), jnp.float32)),
        grid=(nt,),
        in_specs=[pl.BlockSpec((1, tn), lambda i: (0, i)),
                  pl.BlockSpec((tn, H), lambda i: (i, 0))],
        out_specs=(pl.BlockSpec((B, H), lambda i: (0, 0)),
                   pl.BlockSpec((B, H), lambda i: (0, 0))),
        compiler_params=_cparams("arbitrary"),
    )(seg_row, x)

    # Tiny finalize on [B, H] arrays in the wrapper (per review).
    inv_cnt = (1.0 / jnp.maximum(counts, 1).astype(jnp.float32)).reshape(B, 1)
    mu = sums * inv_cnt                                      # E[x]   per graph
    ex2 = sqs * inv_cnt                                      # E[x^2] per graph
    # var of (x - ms*mu) = E[x^2] - ms*(2 - ms)*mu^2 (single-pass, f32 accum;
    # exact two-pass form only needed for strongly off-centered activations).
    var = jnp.maximum(ex2 - ms * (2.0 - ms) * (mu * mu), 0.0)
    inv = lax.rsqrt(var + eps)                               # [B, H]
    scale = w * inv                                          # [B, H]
    shift = b - scale * (ms * mu)                            # [B, H]

    return pl.pallas_call(
        functools.partial(_gn_apply_kernel, n_graphs=B),
        out_shape=jax.ShapeDtypeStruct((N, H), x.dtype),
        grid=(nt,),
        in_specs=[pl.BlockSpec((tn, 1), lambda i: (i, 0)),
                  pl.BlockSpec((tn, H), lambda i: (i, 0)),
                  pl.BlockSpec((B, H), lambda i: (0, 0)),
                  pl.BlockSpec((B, H), lambda i: (0, 0))],
        out_specs=pl.BlockSpec((tn, H), lambda i: (i, 0)),
        compiler_params=_cparams("parallel"),
    )(seg_col, x, scale, shift)


# ---------------------------------------------------------------------------
# NormLayer equivalent
# ---------------------------------------------------------------------------

class Graph:
    def __init__(self, batch_num_nodes):
        self.batch_num_nodes = batch_num_nodes


class NormLayer:
    def __init__(self, hidden_dim, norm_type, max_rows_per_tile=None):
        self.hidden_dim = hidden_dim
        self.norm_type = norm_type
        self.max_rows_per_tile = max_rows_per_tile
        if norm_type in ("batchnorm", "layernorm"):
            self.weight = jnp.ones((hidden_dim,), jnp.float32)
            self.bias = jnp.zeros((hidden_dim,), jnp.float32)
        elif norm_type == "graphnorm":
            self.weight = jnp.ones((hidden_dim,), jnp.float32)
            self.bias = jnp.zeros((hidden_dim,), jnp.float32)
            self.mean_scale = jnp.ones((hidden_dim,), jnp.float32)
        else:
            raise NotImplementedError

    def __call__(self, graph, x):
        if self.norm_type == "batchnorm":
            return batchnorm(x, self.weight, self.bias,
                             max_rows_per_tile=self.max_rows_per_tile)
        if self.norm_type == "layernorm":
            return layernorm(x, self.weight, self.bias,
                             max_rows_per_tile=self.max_rows_per_tile)
        return graphnorm(x, graph.batch_num_nodes, self.weight, self.bias,
                         self.mean_scale,
                         max_rows_per_tile=self.max_rows_per_tile)


# ---------------------------------------------------------------------------
# NumPy references
# ---------------------------------------------------------------------------

def graphnorm_ref(x, batch_list, weight, bias, mean_scale):
    x = np.asarray(x, np.float64)
    batch_list = np.asarray(batch_list)
    idx = np.repeat(np.arange(len(batch_list)), batch_list)
    B, H = len(batch_list), x.shape[1]
    mean = np.zeros((B, H))
    np.add.at(mean, idx, x)
    mean = mean / batch_list[:, None]
    mean_n = mean[idx]
    sub = x - mean_n * np.asarray(mean_scale)
    var = np.zeros((B, H))
    np.add.at(var, idx, sub ** 2)
    var = var / batch_list[:, None]
    std_n = np.sqrt(var + 1e-6)[idx]
    return np.asarray(weight) * sub / std_n + np.asarray(bias)


def layernorm_ref(x, weight, bias, eps=1e-5):
    x = np.asarray(x, np.float64)
    mu = x.mean(-1, keepdims=True)
    var = ((x - mu) ** 2).mean(-1, keepdims=True)
    return (x - mu) / np.sqrt(var + eps) * np.asarray(weight) + np.asarray(bias)


def batchnorm_ref(x, weight, bias, eps=1e-5):
    x = np.asarray(x, np.float64)
    mu = x.mean(0, keepdims=True)
    var = ((x - mu) ** 2).mean(0, keepdims=True)
    return (x - mu) / np.sqrt(var + eps) * np.asarray(weight) + np.asarray(bias)


# ---------------------------------------------------------------------------
# Main
# ---------------------------------------------------------------------------

if __name__ == "__main__":
    key = jax.random.PRNGKey(0)
    hidden = 32
    batch_num_nodes = [150, 170]      # 2 graphs, 320 nodes
    N = sum(batch_num_nodes)

    x = jax.random.normal(key, (N, hidden), dtype=jnp.float32)
    graph = Graph(batch_num_nodes)

    # Small tile caps so this small example still exercises the multi-tile
    # (accumulated / masked-tail / packed) code paths:
    #  - graphnorm tiles are 128-row multiples -> cap 128 gives 3 tiles w/ tail
    #  - batchnorm packs [320,32] -> [80,128]; cap 32 gives 3 tiles w/ tail
    #  - layernorm cap 64 gives 5 tiles

    # --- graphnorm (the custom forward) ---
    layer = NormLayer(hidden, "graphnorm", max_rows_per_tile=128)
    layer.weight = 1.0 + 0.01 * jnp.arange(hidden, dtype=jnp.float32)
    layer.bias = 0.1 * jnp.ones((hidden,), jnp.float32)
    layer.mean_scale = 1.0 - 0.005 * jnp.arange(hidden, dtype=jnp.float32)
    out = jax.block_until_ready(layer(graph, x))
    ref = graphnorm_ref(np.asarray(x), batch_num_nodes,
                        np.asarray(layer.weight), np.asarray(layer.bias),
                        np.asarray(layer.mean_scale))
    np.testing.assert_allclose(np.asarray(out), ref, rtol=1e-4, atol=1e-4)

    # --- layernorm ---
    ln = NormLayer(hidden, "layernorm", max_rows_per_tile=64)
    ln.weight = 1.0 + 0.02 * jnp.arange(hidden, dtype=jnp.float32)
    ln.bias = -0.05 * jnp.ones((hidden,), jnp.float32)
    out_ln = jax.block_until_ready(ln(graph, x))
    np.testing.assert_allclose(
        np.asarray(out_ln),
        layernorm_ref(np.asarray(x), np.asarray(ln.weight), np.asarray(ln.bias)),
        rtol=1e-4, atol=1e-4)

    # --- batchnorm (training-mode batch statistics) ---
    bn = NormLayer(hidden, "batchnorm", max_rows_per_tile=32)
    bn.weight = 1.0 - 0.01 * jnp.arange(hidden, dtype=jnp.float32)
    bn.bias = 0.2 * jnp.ones((hidden,), jnp.float32)
    out_bn = jax.block_until_ready(bn(graph, x))
    np.testing.assert_allclose(
        np.asarray(out_bn),
        batchnorm_ref(np.asarray(x), np.asarray(bn.weight), np.asarray(bn.bias)),
        rtol=1e-4, atol=1e-4)

    print("KERNEL_OK")
</pallas_src>

<mosaic_0001>
module attributes {stable_mosaic.version = 11 : i64} {
  func.func @_gn_stats_kernel(%arg0: i32, %arg1: memref<1x128xi32, #tpu.memory_space<vmem>>, %arg2: memref<128x32xf32, #tpu.memory_space<vmem>>, %arg3: memref<2x32xf32, #tpu.memory_space<vmem>>, %arg4: memref<2x32xf32, #tpu.memory_space<vmem>>) attributes {dimension_semantics = [#tpu.dimension_semantics<arbitrary>], iteration_bounds = array<i64: 3>, scalar_prefetch = 0 : i64, scratch_operands = 0 : i64, tpu.core_type = #tpu.core_type<tc>, window_params = [{transform_indices = @transform_0, window_bounds = array<i64: 1, 128>}, {transform_indices = @transform_1, window_bounds = array<i64: 128, 32>}, {pipeline_mode = #tpu.pipeline_mode<synchronous>, transform_indices = @transform_2, window_bounds = array<i64: 2, 32>}, {pipeline_mode = #tpu.pipeline_mode<synchronous>, transform_indices = @transform_3, window_bounds = array<i64: 2, 32>}]} {
    %c0_i32 = arith.constant 0 : i32
    %0 = arith.cmpi eq, %arg0, %c0_i32 : i32
    %1 = arith.extui %0 : i1 to i32
    %c0_i32_0 = arith.constant 0 : i32
    %2 = arith.cmpi ne, %1, %c0_i32_0 : i32
    scf.if %2 {
      %cst = arith.constant 0.000000e+00 : f32
      %17 = vector.broadcast %cst : f32 to vector<2x32xf32>
      %c0_7 = arith.constant 0 : index
      %c0_8 = arith.constant 0 : index
      %18 = vector.load %arg3[%c0_7, %c0_8] : memref<2x32xf32, #tpu.memory_space<vmem>>, vector<2x32xf32>
      tpu.vector_store %arg3[%c0_7, %c0_8], %17 {strides = array<i32>} : memref<2x32xf32, #tpu.memory_space<vmem>>, vector<2x32xf32>,
      %cst_9 = arith.constant 0.000000e+00 : f32
      %19 = vector.broadcast %cst_9 : f32 to vector<2x32xf32>
      %c0_10 = arith.constant 0 : index
      %c0_11 = arith.constant 0 : index
      %20 = vector.load %arg4[%c0_10, %c0_11] : memref<2x32xf32, #tpu.memory_space<vmem>>, vector<2x32xf32>
      tpu.vector_store %arg4[%c0_10, %c0_11], %19 {strides = array<i32>} : memref<2x32xf32, #tpu.memory_space<vmem>>, vector<2x32xf32>,
    } else {
    }
    %c0 = arith.constant 0 : index
    %c0_1 = arith.constant 0 : index
    %3 = vector.load %arg2[%c0, %c0_1] : memref<128x32xf32, #tpu.memory_space<vmem>>, vector<128x32xf32>
    %c0_2 = arith.constant 0 : index
    %c0_3 = arith.constant 0 : index
    %4 = vector.load %arg1[%c0_2, %c0_3] : memref<1x128xi32, #tpu.memory_space<vmem>>, vector<1x128xi32>
    %5 = tpu.iota {dimensions = array<i32: 0>} : vector<2x1xi32>
    %6 = vector.broadcast %5 : vector<2x1xi32> to vector<2x128xi32>
    %7 = vector.broadcast %4 : vector<1x128xi32> to vector<2x128xi32>
    %8 = arith.cmpi eq, %6, %7 : vector<2x128xi32>
    %9 = arith.extui %8 : vector<2x128xi1> to vector<2x128xi32>
    %10 = arith.sitofp %9 : vector<2x128xi32> to vector<2x128xf32>
    %c2_i32 = arith.constant 2 : i32
    %11 = arith.cmpi ne, %arg0, %c2_i32 : i32
    %12 = arith.extui %11 : i1 to i32
    %c0_i32_4 = arith.constant 0 : i32
    %13 = arith.cmpi ne, %12, %c0_i32_4 : i32
    scf.if %13 {
      %c0_7 = arith.constant 0 : index
      %c0_8 = arith.constant 0 : index
      %17 = vector.load %arg3[%c0_7, %c0_8] : memref<2x32xf32, #tpu.memory_space<vmem>>, vector<2x32xf32>
      %cst = arith.constant dense<0.000000e+00> : vector<2x32xf32>
      %18 = tpu.matmul %10, %3, %cst {dimension_numbers = #tpu.dot_dimension_numbers<[1], [0], [0], [1], [0, 0, 1, 1], [], []>} : vector<2x128xf32>, vector<128x32xf32>, vector<2x32xf32> -> vector<2x32xf32>
      %19 = arith.addf %17, %18 : vector<2x32xf32>
      %c0_9 = arith.constant 0 : index
      %c0_10 = arith.constant 0 : index
      %20 = vector.load %arg3[%c0_9, %c0_10] : memref<2x32xf32, #tpu.memory_space<vmem>>, vector<2x32xf32>
      tpu.vector_store %arg3[%c0_9, %c0_10], %19 {strides = array<i32>} : memref<2x32xf32, #tpu.memory_space<vmem>>, vector<2x32xf32>,
      %c0_11 = arith.constant 0 : index
      %c0_12 = arith.constant 0 : index
      %21 = vector.load %arg4[%c0_11, %c0_12] : memref<2x32xf32, #tpu.memory_space<vmem>>, vector<2x32xf32>
      %22 = arith.mulf %3, %3 : vector<128x32xf32>
      %cst_13 = arith.constant dense<0.000000e+00> : vector<2x32xf32>
      %23 = tpu.matmul %10, %22, %cst_13 {dimension_numbers = #tpu.dot_dimension_numbers<[1], [0], [0], [1], [0, 0, 1, 1], [], []>} : vector<2x128xf32>, vector<128x32xf32>, vector<2x32xf32> -> vector<2x32xf32>
      %24 = arith.addf %21, %23 : vector<2x32xf32>
      %c0_14 = arith.constant 0 : index
      %c0_15 = arith.constant 0 : index
      %25 = vector.load %arg4[%c0_14, %c0_15] : memref<2x32xf32, #tpu.memory_space<vmem>>, vector<2x32xf32>
      tpu.vector_store %arg4[%c0_14, %c0_15], %24 {strides = array<i32>} : memref<2x32xf32, #tpu.memory_space<vmem>>, vector<2x32xf32>,
    } else {
    }
    %c2_i32_5 = arith.constant 2 : i32
    %14 = arith.cmpi eq, %arg0, %c2_i32_5 : i32
    %15 = arith.extui %14 : i1 to i32
    %c0_i32_6 = arith.constant 0 : i32
    %16 = arith.cmpi ne, %15, %c0_i32_6 : i32
    scf.if %16 {
      %17 = tpu.iota {dimensions = array<i32: 0>} : vector<128x1xi32>
      %c64_i32 = arith.constant 64 : i32
      %18 = vector.broadcast %c64_i32 : i32 to vector<128x1xi32>
      %19 = arith.cmpi slt, %17, %18 : vector<128x1xi32>
      %cst = arith.constant 0.000000e+00 : f32
      %20 = vector.shape_cast %19 : vector<128x1xi1> to vector<128x1xi1>
      %21 = vector.broadcast %20 : vector<128x1xi1> to vector<128x32xi1>
      %22 = vector.broadcast %cst : f32 to vector<128x32xf32>
      %23 = arith.select %21, %3, %22 : vector<128x32xi1>, vector<128x32xf32>
      %c0_7 = arith.constant 0 : index
      %c0_8 = arith.constant 0 : index
      %24 = vector.load %arg3[%c0_7, %c0_8] : memref<2x32xf32, #tpu.memory_space<vmem>>, vector<2x32xf32>
      %cst_9 = arith.constant dense<0.000000e+00> : vector<2x32xf32>
      %25 = tpu.matmul %10, %23, %cst_9 {dimension_numbers = #tpu.dot_dimension_numbers<[1], [0], [0], [1], [0, 0, 1, 1], [], []>} : vector<2x128xf32>, vector<128x32xf32>, vector<2x32xf32> -> vector<2x32xf32>
      %26 = arith.addf %24, %25 : vector<2x32xf32>
      %c0_10 = arith.constant 0 : index
      %c0_11 = arith.constant 0 : index
      %27 = vector.load %arg3[%c0_10, %c0_11] : memref<2x32xf32, #tpu.memory_space<vmem>>, vector<2x32xf32>
      tpu.vector_store %arg3[%c0_10, %c0_11], %26 {strides = array<i32>} : memref<2x32xf32, #tpu.memory_space<vmem>>, vector<2x32xf32>,
      %c0_12 = arith.constant 0 : index
      %c0_13 = arith.constant 0 : index
      %28 = vector.load %arg4[%c0_12, %c0_13] : memref<2x32xf32, #tpu.memory_space<vmem>>, vector<2x32xf32>
      %29 = arith.mulf %23, %23 : vector<128x32xf32>
      %cst_14 = arith.constant dense<0.000000e+00> : vector<2x32xf32>
      %30 = tpu.matmul %10, %29, %cst_14 {dimension_numbers = #tpu.dot_dimension_numbers<[1], [0], [0], [1], [0, 0, 1, 1], [], []>} : vector<2x128xf32>, vector<128x32xf32>, vector<2x32xf32> -> vector<2x32xf32>
      %31 = arith.addf %28, %30 : vector<2x32xf32>
      %c0_15 = arith.constant 0 : index
      %c0_16 = arith.constant 0 : index
      %32 = vector.load %arg4[%c0_15, %c0_16] : memref<2x32xf32, #tpu.memory_space<vmem>>, vector<2x32xf32>
      tpu.vector_store %arg4[%c0_15, %c0_16], %31 {strides = array<i32>} : memref<2x32xf32, #tpu.memory_space<vmem>>, vector<2x32xf32>,
    } else {
    }
    return
  }
  func.func @transform_0(%arg0: i32) -> (i32, i32) {
    %c0_i32 = arith.constant 0 : i32
    %c0_i32_0 = arith.constant 0 : i32
    return %c0_i32, %arg0 : i32, i32
  }
  func.func @transform_1(%arg0: i32) -> (i32, i32) {
    %c0_i32 = arith.constant 0 : i32
    %c0_i32_0 = arith.constant 0 : i32
    return %arg0, %c0_i32 : i32, i32
  }
  func.func @transform_2(%arg0: i32) -> (i32, i32) {
    %c0_i32 = arith.constant 0 : i32
    %c0_i32_0 = arith.constant 0 : i32
    %c0_i32_1 = arith.constant 0 : i32
    return %c0_i32, %c0_i32_0 : i32, i32
  }
  func.func @transform_3(%arg0: i32) -> (i32, i32) {
    %c0_i32 = arith.constant 0 : i32
    %c0_i32_0 = arith.constant 0 : i32
    %c0_i32_1 = arith.constant 0 : i32
    return %c0_i32, %c0_i32_0 : i32, i32
  }
}

</mosaic_0001>

<bundles_post_ra>
// kernel: tpu_custom_call.1
= control target key start
LH: loop header
LB: loop body
LE: loop exit
PB: predicated region body
PF: predicated region fallthrough
CT: control target
= control target key end

     0   :  { %9 = vsyncpa [#allocation3], 0  ;;  %s1302_s0 = inlined_call_operand.vmem [shape: s32[1,320], index: 0, kind: input, shape index: {}]   ;;  %s1303_s1 = inlined_call_operand.vmem [shape: f32[320,32], index: 1, kind: input, shape index: {}]   ;;  %s1304_s2 = inlined_call_operand.hbm [shape: f32[2,32], index: 2, kind: output, shape index: {0}]   ;;  %s1305_s3 = inlined_call_operand.hbm [shape: f32[2,32], index: 3, kind: output, shape index: {1}]  }
   0x1   :  { %10 = vsyncpa [#allocation5], 0  ;;  %s1098_s12 = smov 0  }
   0x2 LB: > { %s1104_s13 = sadd.s32 4294967295, %s1065_s12   ;;  %p718_p0 = scmp.ge.s32.totalorder %s1065_s12, 1  ;;  %s1065_s12 = sphi %s1098_s12, %s16_s12  }
   0x3   : > { %p149_p1 = scmp.lt.s32.totalorder %s1065_s12, 4 }
   0x5   : > { %p150_p2 = pnand %p718_p0, %p149_p1 }
   0x6   : > { %p175_p3 = scmp.lt.s32.totalorder (!%p150_p2), %s1104_s13, 2  ;;  %s719_s14 = sshll.u32 (!%p150_p2), %s1104_s13, 4 }
   0x7   : > { %153 = sbr.rel (%p150_p2) target bundleno = 556 (0x22c), region = 28  ;;  %p183_p4 = scmp.lt.s32.totalorder (!%p150_p2), %s719_s14, 39 }
   0x8   : > { %p721_p5 = scmp.ne.s32.totalorder (!%p150_p2), %s1104_s13, 0 }
   0xe   : > { %s1111_s15 = scalar_select %p175_p3, %s1104_s13, 2 }
   0xf   : > { %s1307_s14 = smov (!%p183_p4, %s719_s14), 39  ;;  %195 = sbr.rel (%p721_p5) target bundleno = 22 (0x16), region = 32 }
  0x10   : > { %s177_s18 = scalar_lea.vmem %s1302_s0, %s1111_s15  ;;  %s720_s19 = sshll.u32 %s1307_s14, 3  ;;  %vm196_vm0 = vcmask (!%p721_p5), 254976   ;;  %v1067_v0 = vmov (!%p721_p5), 0.0  }
  0x11   : > { %s186_s22 = scalar_lea.vmem %s1303_s1, %s720_s19  ;;  %197 = vst.msk [vmem:[#allocation2] sm:$0x3] (!%p721_p5), %vm196_vm0, %v1067_v0  ;;  %198 = vst.msk [vmem:[#allocation4] sm:$0x3] (!%p721_p5), %vm196_vm0, %v1067_v0 }
  0x16 PF: > { %v1121_v1 = vld [vmem:[%s186_s22] sm:$0xff]  ;;  %v1123_v2 = vld [vmem:[%s186_s22 + $0x8] sm:$0xff]  ;;  %v1125_v3 = vld [vmem:[%s186_s22 + $0x10] sm:$0xff]  ;;  %v216_v4 = vlaneseq  ;;  %p724_p6 = scmp.eq.s32.totalorder %s1104_s13, 2 }
  0x17   : > { %v1127_v5 = vld [vmem:[%s186_s22 + $0x18] sm:$0xff]  ;;  %v1129_v6 = vld [vmem:[%s186_s22 + $0x20] sm:$0xff]  ;;  %v1131_v7 = vld [vmem:[%s186_s22 + $0x28] sm:$0xff]  ;;  %v897_v20 = vpack.c.bf16 (!%p724_p6), %v1123_v2, %v1121_v1  ;;  %v304_v21 = vmul.f32 (!%p724_p6), %v1121_v1, %v1121_v1  ;;  %v305_v22 = vmul.f32 (!%p724_p6), %v1123_v2, %v1123_v2  ;;  %v1068_v23 = vmov (!%p724_p6), 0.0|0.0  }
  0x18   : > { %v1133_v8 = vld [vmem:[%s186_s22 + $0x30] sm:$0xff]  ;;  %v1135_v9 = vld [vmem:[%s186_s22 + $0x38] sm:$0xff]  ;;  %v207_v10 = vld [vmem:[%s186_s22 + $0x40] sm:$0xff]  ;;  %v1137_v11 = vshrl.u32 %v216_v4, 7  ;;  %228 = sbr.rel (%p724_p6) target bundleno = 273 (0x111), region = 36  ;;  %896 = vmatprep.subr.bf16.mxu0 (!%p724_p6), %v1068_v23  ;;  %920 = vmatprep.subr.bf16.mxu1 (!%p724_p6), %v1068_v23  ;;  %v306_v24 = vmul.f32 (!%p724_p6), %v1125_v3, %v1125_v3  ;;  %v307_v25 = vmul.f32 (!%p724_p6), %v1127_v5, %v1127_v5  ;;  %v900_v27 = vpack.c.bf16 (!%p724_p6), %v1127_v5, %v1125_v3 }
  0x19   : > { %v208_v12 = vld [vmem:[%s186_s22 + $0x48] sm:$0xff]  ;;  %v1139_v13 = vld [vmem:[%s186_s22 + $0x50] sm:$0xff]  ;;  %v210_v14 = vld [vmem:[%s186_s22 + $0x58] sm:$0xff]  ;;  %898 = vmatpush3.bf16.msra.mxu0 (!%p724_p6), %v897_v20  ;;  %v921_v26 = vpack.c.bf16 (!%p724_p6), %v305_v22, %v304_v21  ;;  %v308_v29 = vmul.f32 (!%p724_p6), %v1129_v6, %v1129_v6  ;;  %v309_v30 = vmul.f32 (!%p724_p6), %v1131_v7, %v1131_v7  ;;  %v903_v31 = vpack.c.bf16 (!%p724_p6), %v1131_v7, %v1129_v6 }
  0x1a   : > { %v1141_v15 = vld [vmem:[%s186_s22 + $0x60] sm:$0xff]  ;;  %v1143_v16 = vld [vmem:[%s186_s22 + $0x68] sm:$0xff]  ;;  %v1145_v17 = vld [vmem:[%s186_s22 + $0x70] sm:$0xff]  ;;  %899 = vmatprep.subr.bf16.mxu0 (!%p724_p6), %v1068_v23  ;;  %v924_v28 = vpack.c.bf16 (!%p724_p6), %v307_v25, %v306_v24  ;;  %v310_v33 = vmul.f32 (!%p724_p6), %v1133_v8, %v1133_v8  ;;  %v311_v34 = vmul.f32 (!%p724_p6), %v1135_v9, %v1135_v9  ;;  %vm1069_vm2 = vmmov (!%p724_p6), 0  }
  0x1b   : > { %v1147_v18 = vld [vmem:[%s186_s22 + $0x78] sm:$0xff]  ;;  %v1149_v19 = vld [vmem:[%s177_s18] ss:$0 sm:$0xff]  ;;  %922 = vmatpush3.bf16.msra.mxu1 (!%p724_p6), %v921_v26  ;;  %v927_v32 = vpack.c.bf16 (!%p724_p6), %v309_v30, %v308_v29  ;;  %v1070_v35 = vmov (!%p724_p6), 0.0   ;;  %v906_v36 = vpack.c.bf16 (!%p724_p6), %v1135_v9, %v1133_v8  ;;  %v312_v38 = vmul.f32 (!%p724_p6), %v207_v10, %v207_v10  ;;  %v303_v57 = vld [vmem:[#allocation4] sm:$0x3] (!%p724_p6) }
  0x1c   : > { %vm222_vm1 = vcmp.eq.s32.totalorder %v1137_v11, %v1149_v19  ;;  %923 = vmatprep.subr.bf16.mxu1 (!%p724_p6), %v1068_v23  ;;  %820 = vmatprep.mubr.msk.f32.mxu0 (!%p724_p6), %vm1069_vm2, %v1070_v35  ;;  %v930_v37 = vpack.c.bf16 (!%p724_p6), %v311_v34, %v310_v33  ;;  %v313_v39 = vmul.f32 (!%p724_p6), %v208_v12, %v208_v12  ;;  %v1071_v54 = vmov (!%p724_p6), 1.0   ;;  %v229_v55 = vld [vmem:[#allocation2] sm:$0x3] (!%p724_p6) }
  0x1d   : > { %901 = vmatpush3.bf16.msra.mxu0 (!%p724_p6), %v900_v27  ;;  %855 = vmatprep.mubr.msk.f32.mxu1 (!%p724_p6), %vm1069_vm2, %v1070_v35  ;;  %v909_v40 = vpack.c.bf16 (!%p724_p6), %v208_v12, %v207_v10  ;;  %v314_v42 = vmul.f32 (!%p724_p6), %v1139_v13, %v1139_v13  ;;  %v315_v43 = vmul.f32 (!%p724_p6), %v210_v14, %v210_v14  ;;  %vm301_vm3 = vcmask (!%p724_p6), 254976  }
  0x1e   : > { %902 = vmatprep.subr.bf16.mxu0 (!%p724_p6), %v1068_v23  ;;  %v933_v41 = vpack.c.bf16 (!%p724_p6), %v313_v39, %v312_v38  ;;  %v912_v44 = vpack.c.bf16 (!%p724_p6), %v210_v14, %v1139_v13  ;;  %v316_v46 = vmul.f32 (!%p724_p6), %v1141_v15, %v1141_v15  ;;  %v317_v47 = vmul.f32 (!%p724_p6), %v1143_v16, %v1143_v16 }
  0x1f   : > { %925 = vmatpush3.bf16.msra.mxu1 %v924_v28  ;;  %v936_v45 = vpack.c.bf16 %v315_v43, %v314_v42  ;;  %v915_v48 = vpack.c.bf16 %v1143_v16, %v1141_v15  ;;  %v318_v50 = vmul.f32 %v1145_v17, %v1145_v17  ;;  %v319_v51 = vmul.f32 %v1147_v18, %v1147_v18 }
  0x20   : > { %926 = vmatprep.subr.bf16.mxu1 %v1068_v23  ;;  %v939_v49 = vpack.c.bf16 %v317_v47, %v316_v46  ;;  %v918_v52 = vpack.c.bf16 %v1147_v18, %v1145_v17 }
  0x21   : > { %904 = vmatpush3.bf16.msra.mxu0 %v903_v31  ;;  %v942_v53 = vpack.c.bf16 %v319_v51, %v318_v50 }
  0x22   : > { %905 = vmatprep.subr.bf16.mxu0 %v1068_v23 }
  0x23   : > { %928 = vmatpush3.bf16.msra.mxu1 %v927_v32 }
  0x24   : > { %929 = vmatprep.subr.bf16.mxu1 %v1068_v23 }
  0x25   : > { %907 = vmatpush3.bf16.msra.mxu0 %v906_v36 }
  0x26   : > { %908 = vmatprep.subr.bf16.mxu0 %v1068_v23 }
  0x27   : > { %931 = vmatpush3.bf16.msra.mxu1 %v930_v37 }
  0x28   : > { %932 = vmatprep.subr.bf16.mxu1 %v1068_v23 }
  0x29   : > { %910 = vmatpush3.bf16.msra.mxu0 %v909_v40 }
  0x2a   : > { %911 = vmatprep.subr.bf16.mxu0 %v1068_v23 }
  0x2b   : > { %934 = vmatpush3.bf16.msra.mxu1 %v933_v41 }
  0x2c   : > { %935 = vmatprep.subr.bf16.mxu1 %v1068_v23 }
  0x2d   : > { %913 = vmatpush3.bf16.msra.mxu0 %v912_v44 }
  0x2e   : > { %914 = vmatprep.subr.bf16.mxu0 %v1068_v23 }
  0x2f   : > { %937 = vmatpush3.bf16.msra.mxu1 %v936_v45 }
  0x30   : > { %938 = vmatprep.subr.bf16.mxu1 %v1068_v23 }
  0x31   : > { %916 = vmatpush3.bf16.msra.mxu0 %v915_v48 }
  0x32   : > { %917 = vmatprep.subr.bf16.mxu0 %v1068_v23 }
  0x33   : > { %940 = vmatpush3.bf16.msra.mxu1 %v939_v49 }
  0x34   : > { %941 = vmatprep.subr.bf16.mxu1 %v1068_v23 }
  0x35   : > { %919 = vmatpush3.bf16.msra.mxu0 %v918_v52 }
  0x37   : > { %943 = vmatpush3.bf16.msra.mxu1 %v942_v53 }
  0x38   : > { %821 = vmatmul.mubr.msk.f32.vlgmr.msra.gmra.mrb[0].mxu0 %vm222_vm1, %v1071_v54 }
  0x3a   : > { %856 = vmatmul.mubr.msk.f32.vlgmr.msra.gmra.mrb[0].mxu1 %vm222_vm1, %v1071_v54 }
 0x10b   : > { %v296_v56 = vpop.f32.mrb[0].mxu0 }
 0x10c   : > { %v300_v58 = vadd.f32 %v296_v56, %v229_v55  ;;  %v822_v59 = vpop.f32.mrb[1].mxu0 }
 0x10d   : > { %v386_v60 = vpop.f32.mrb[0].mxu1 }
 0x10e   : > { %302 = vst.msk [vmem:[#allocation2] sm:$0x3] %vm301_vm3, %v300_v58  ;;  %v390_v61 = vadd.f32 %v386_v60, %v303_v57  ;;  %v857_v62 = vpop.f32.mrb[1].mxu1 }
 0x110   : > { %391 = vst.msk [vmem:[#allocation4] sm:$0x3] %vm301_vm3, %v390_v61 }
 0x111 PF: > { %p727_p7 = scmp.ne.s32.totalorder %s1104_s13, 2 }
 0x112   : > { %v945_v63 = vpack.c.bf16 (!%p727_p7), %v1123_v2, %v1121_v1  ;;  %v550_v0 = vmul.f32 (!%p727_p7), %v1121_v1, %v1121_v1  ;;  %v551_v4 = vmul.f32 (!%p727_p7), %v1123_v2, %v1123_v2  ;;  %v1072_v10 = vmov (!%p727_p7), 0.0|0.0  }
 0x113   : > { %395 = sbr.rel (%p727_p7) target bundleno = 508 (0x1fc), region = 40  ;;  %944 = vmatprep.subr.bf16.mxu0 (!%p727_p7), %v1072_v10  ;;  %956 = vmatprep.subr.bf16.mxu1 (!%p727_p7), %v1072_v10  ;;  %v552_v12 = vmul.f32 (!%p727_p7), %v1125_v3, %v1125_v3  ;;  %v553_v13 = vmul.f32 (!%p727_p7), %v1127_v5, %v1127_v5  ;;  %v948_v15 = vpack.c.bf16 (!%p727_p7), %v1127_v5, %v1125_v3  ;;  %vm1073_vm4 = vmmov (!%p727_p7), 0  }
 0x114   : > { %946 = vmatpush3.bf16.msra.mxu0 (!%p727_p7), %v945_v63  ;;  %v957_v14 = vpack.c.bf16 (!%p727_p7), %v551_v4, %v550_v0  ;;  %v554_v2 = vmul.f32 (!%p727_p7), %v1129_v6, %v1129_v6  ;;  %v555_v16 = vmul.f32 (!%p727_p7), %v1131_v7, %v1131_v7  ;;  %v1074_v17 = vmov (!%p727_p7), 0.0  }
 0x115   : > { %947 = vmatprep.subr.bf16.mxu0 (!%p727_p7), %v1072_v10  ;;  %v960_v1 = vpack.c.bf16 (!%p727_p7), %v553_v13, %v552_v12  ;;  %874 = vmatprep.mubr.msk.f32.mxu0 (!%p727_p7), %vm1073_vm4, %v1074_v17  ;;  %v951_v18 = vpack.c.bf16 (!%p727_p7), %v1131_v7, %v1129_v6  ;;  %v556_v5 = vmul.f32 (!%p727_p7), %v1133_v8, %v1133_v8  ;;  %v1075_v6 = vmov (!%p727_p7), 1.0   ;;  %v475_v7 = vld [vmem:[#allocation2] sm:$0x3] (!%p727_p7) }
 0x116   : > { %958 = vmatpush3.bf16.msra.mxu1 (!%p727_p7), %v957_v14  ;;  %893 = vmatprep.mubr.msk.f32.mxu1 (!%p727_p7), %vm1073_vm4, %v1074_v17  ;;  %v963_v3 = vpack.c.bf16 (!%p727_p7), %v555_v16, %v554_v2  ;;  %v557_v20 = vmul.f32 (!%p727_p7), %v1135_v9, %v1135_v9  ;;  %v954_v21 = vpack.c.bf16 (!%p727_p7), %v1135_v9, %v1133_v8  ;;  %vm547_vm5 = vcmask (!%p727_p7), 254976  }
 0x117   : > { %959 = vmatprep.subr.bf16.mxu1 (!%p727_p7), %v1072_v10  ;;  %v549_v24 = vld [vmem:[#allocation4] sm:$0x3] (!%p727_p7) }
 0x118   : > { %949 = vmatpush3.bf16.msra.mxu0 (!%p727_p7), %v948_v15  ;;  %v966_v22 = vpack.c.bf16 (!%p727_p7), %v557_v20, %v556_v5 }
 0x119   : > { %950 = vmatprep.subr.bf16.mxu0 (!%p727_p7), %v1072_v10 }
 0x11a   : > { %961 = vmatpush3.bf16.msra.mxu1 %v960_v1 }
 0x11b   : > { %962 = vmatprep.subr.bf16.mxu1 %v1072_v10 }
 0x11c   : > { %952 = vmatpush3.bf16.msra.mxu0 %v951_v18 }
 0x11d   : > { %953 = vmatprep.subr.bf16.mxu0 %v1072_v10 }
 0x11e   : > { %964 = vmatpush3.bf16.msra.mxu1 %v963_v3 }
 0x11f   : > { %965 = vmatprep.subr.bf16.mxu1 %v1072_v10 }
 0x120   : > { %955 = vmatpush3.bf16.msra.mxu0 %v954_v21 }
 0x122   : > { %967 = vmatpush3.bf16.msra.mxu1 %v966_v22 }
 0x123   : > { %875 = vmatmul.mubr.msk.f32.vlgmr.msra.gmra.mrb[0].mxu0 %vm222_vm1, %v1075_v6 }
 0x125   : > { %894 = vmatmul.mubr.msk.f32.vlgmr.msra.gmra.mrb[0].mxu1 %vm222_vm1, %v1075_v6 }
 0x1f6   : > { %v542_v23 = vpop.f32.mrb[0].mxu0 }
 0x1f7   : > { %v546_v8 = vadd.f32 %v542_v23, %v475_v7  ;;  %v876_v9 = vpop.f32.mrb[1].mxu0 }
 0x1f8   : > { %v632_v25 = vpop.f32.mrb[0].mxu1 }
 0x1f9   : > { %548 = vst.msk [vmem:[#allocation2] sm:$0x3] %vm547_vm5, %v546_v8  ;;  %v636_v26 = vadd.f32 %v632_v25, %v549_v24  ;;  %v895_v27 = vpop.f32.mrb[1].mxu1 }
 0x1fb   : > { %637 = vst.msk [vmem:[#allocation4] sm:$0x3] %vm547_vm5, %v636_v26 }
 0x1fc PF: > { %s1076_s23 = smov [#allocation2]   ;;  %s1077_s25 = smov [#allocation4]  }
 0x1fd   : > { %s645_s24 = sshll.u32 %s1076_s23, 4  ;;  %s656_s26 = sshll.u32 %s1077_s25, 4  ;;  %s646_s24 = int_to_ptr.vmem [resolvable:$true] %s645_s24  ;;  %s1248_s26 = int_to_ptr.vmem [resolvable:$true] %s656_s26 }
 0x1fe   : > { %s999_s27 = scalar_lea.vmem %s646_s24, 32  ;;  %p1006_p11 = scmp.lt.s32.totalorder %s646_s24, %s646_s24 }
 0x1ff   : > { %p1000_p8 = scmp.ne.s32.totalorder %s646_s24, %s999_s27  ;;  %p1007_p12 = scmp.lt.s32.totalorder %s999_s27, %s999_s27 }
 0x201   : > { %p1001_p9 = pnand %p1000_p8, %p724_p6  ;;  %p1008_p13 = por %p1007_p12, %p1006_p11 }
 0x203   : > { %p1002_p10 = pneg %p1001_p9 }
 0x205   : > { %p1009_p0 = pnand %p1008_p13, %p1002_p10 }
 0x207   : > { %1012 = shalt.err (!%p1009_p0)
}
 0x208   : > { %s1013_s30 = scalar_lea.hbm %s1304_s2, 32 }
 0x209   : > { %p1014_p1 = scmp.ne.s32.totalorder %s1304_s2, %s1013_s30  ;;  %p1019_p4 = scmp.lt.u32.totalorder %s1013_s30, %s1304_s2 }
 0x20b   : > { %p1015_p2 = pnand %p1014_p1, %p724_p6 }
 0x20d   : > { %p1016_p3 = pneg %p1015_p2 }
 0x20f   : > { %p1021_p5 = pnand %p1019_p4, %p1016_p3 }
 0x211   : > { %1024 = shalt.err (!%p1021_p5)
}
 0x212   : > { %969 = dma.vmem_to_hbm [thread:$0]  (%p724_p6), %s646_s24, 32, %s1304_s2, [#allocation3]  }
 0x213   : > { %s1025_s10 = scalar_lea.vmem %s1248_s26, 32  ;;  %p1032_p10 = scmp.lt.s32.totalorder %s1248_s26, %s1248_s26 }
 0x214   : > { %p1026_p7 = scmp.ne.s32.totalorder %s1248_s26, %s1025_s10  ;;  %p1033_p11 = scmp.lt.s32.totalorder %s1025_s10, %s1025_s10 }
 0x216   : > { %p1027_p8 = pnand %p1026_p7, %p724_p6  ;;  %p1034_p12 = por %p1033_p11, %p1032_p10 }
 0x218   : > { %p1028_p9 = pneg %p1027_p8 }
 0x21a   : > { %p1035_p13 = pnand %p1034_p12, %p1028_p9 }
 0x21c   : > { %1038 = shalt.err (!%p1035_p13)
}
 0x21d   : > { %s1039_s15 = scalar_lea.hbm %s1305_s3, 32 }
 0x21e   : > { %p1040_p0 = scmp.ne.s32.totalorder %s1305_s3, %s1039_s15  ;;  %p1045_p3 = scmp.lt.u32.totalorder %s1039_s15, %s1305_s3 }
 0x220   : > { %p1041_p1 = pnand %p1040_p0, %p724_p6 }
 0x222   : > { %p1042_p2 = pneg %p1041_p1 }
 0x224   : > { %p1047_p4 = pnand %p1045_p3, %p1042_p2 }
 0x226   : > { %1050 = shalt.err (!%p1047_p4)
}
 0x227   : > { %971 = dma.vmem_to_hbm [thread:$0]  (%p724_p6), %s1248_s26, 32, %s1305_s3, [#allocation5]  }
 0x228   : > { %1056 = dma.done.wait (%p724_p6), [#allocation3], 32  }
 0x229   : > { %1058 = vsyncadd (%p724_p6), [#allocation3], 4294967264 }
 0x22a   : > { %1060 = dma.done.wait (%p724_p6), [#allocation5], 32  }
 0x22b   : > { %1062 = vsyncadd (%p724_p6), [#allocation5], 4294967264 }
 0x22c PF: > { %s16_s12 = sadd.s32 1, %s1065_s12  }
 0x22d   : > { %p13_p5 = scmp.ge.s32.totalorder %s16_s12, 5  }
 0x22f   :  { %15 = sbr.rel (!%p13_p5) target bundleno = 2 (0x2), region = 78 }
 0x236   :  { %673 = vsyncpa [#allocation3], 1 }
 0x237   :  { %675 = vsyncpa [#allocation3 + $0x1], 1 }
 0x238   :  { %676 = vsyncpa [#allocation5], 1 }

</bundles_post_ra>
